<compile_context>
chip_gen: v7x
topology: tpu7x:2x2x1
jax: 0.10.0
libtpu: 0.0.40
codegen_flags: <defaults>
</compile_context>

<pallas_src>
import jax
import jax.numpy as jnp
from jax import lax
from jax.experimental import pallas as pl
from jax.experimental.pallas import tpu as pltpu

KH, KW, STRIDE = 4, 4, 2


# ----------------------------- Pallas kernel ------------------------------ #
def _conv_mm_relu_kernel(p_ref, w_ref, b_ref, o_ref, acc_ref):
    # p_ref:   (TILE_K, TILE_HW)  im2col patches (transposed), one batch element
    # w_ref:   (Cout, TILE_K)     flattened conv weight
    # b_ref:   (Cout, 1)          bias
    # o_ref:   (Cout, TILE_HW)    output tile (lane-dense: spatial in lanes)
    # acc_ref: (Cout, TILE_HW)    f32 accumulator scratch (lives across K steps)
    k = pl.program_id(2)

    @pl.when(k == 0)
    def _():
        # Fold the bias into the accumulator init (one lane-broadcast per tile).
        acc_ref[...] = jnp.broadcast_to(b_ref[...], acc_ref.shape)

    acc_ref[...] += jnp.dot(w_ref[...], p_ref[...],
                            preferred_element_type=jnp.float32)

    @pl.when(k == pl.num_programs(2) - 1)
    def _():
        o_ref[...] = jnp.maximum(acc_ref[...], 0.0).astype(o_ref.dtype)


# ------------------------------- glue (JAX) -------------------------------- #
def _im2col_transposed_nchw(x_nchw, Ho, Wo):
    """(N, Cin, H, W) -> (N, K, Ho*Wo) with K ordered as (cin, kh, kw)."""
    N, Cin, H, W = x_nchw.shape
    slices = []
    for i in range(KH):
        for j in range(KW):
            slices.append(
                x_nchw[:, :, i:i + STRIDE * Ho:STRIDE, j:j + STRIDE * Wo:STRIDE]
            )  # each (N, Cin, Ho, Wo)
    p = jnp.stack(slices, axis=2)                  # (N, Cin, KH*KW, Ho, Wo)
    return p.reshape(N, Cin * KH * KW, Ho * Wo)    # (N, K, HW)


@jax.jit
def cnn_layer_forward(x_nchw, weight_oihw, bias):
    """Forward pass of CNNLayer: Conv2d(k=4, s=2) + ReLU.

    x_nchw:      (N, Cin, H, W)     -- PyTorch NCHW layout
    weight_oihw: (Cout, Cin, 4, 4)  -- PyTorch Conv2d weight layout
    bias:        (Cout,)
    returns:     (N, Cout, Ho, Wo)  -- NCHW, matching PyTorch
    """
    N, Cin, H, W = x_nchw.shape
    Cout = weight_oihw.shape[0]
    Ho = (H - KH) // STRIDE + 1
    Wo = (W - KW) // STRIDE + 1
    HW = Ho * Wo
    K = Cin * KH * KW

    # im2col (transposed so spatial sits in lanes); weight flatten matches K order.
    # TODO(synk): the im2col expansion is still materialized by XLA; a fully
    # in-kernel patch gather (memory_space=pl.ANY + manual DMA) would remove the
    # KH*KW HBM read amplification.
    patches = _im2col_transposed_nchw(x_nchw, Ho, Wo)        # (N, K, HW)
    w2d = weight_oihw.reshape(Cout, K)                       # (Cout, K)
    b2d = bias.reshape(Cout, 1)

    # --- tile sizes (last dims multiple of 128, or the full dim when small) ---
    TILE_HW = HW if HW <= 512 else 512          # lane dim of patches/output
    TILE_K = K if K <= 2048 else 1024           # reduction dim (128-multiple if tiled)
    # Pad K so the reduction axis divides evenly (partial reduction blocks would
    # read unspecified padding; zero padding is exact).
    Kp = pl.cdiv(K, TILE_K) * TILE_K
    if Kp != K:
        patches = jnp.pad(patches, ((0, 0), (0, Kp - K), (0, 0)))
        w2d = jnp.pad(w2d, ((0, 0), (0, Kp - K)))

    grid = (N, pl.cdiv(HW, TILE_HW), Kp // TILE_K)

    cost = pl.CostEstimate(
        flops=2 * N * HW * Kp * Cout,
        transcendentals=0,
        bytes_accessed=4 * (N * Kp * HW + Cout * Kp + Cout + N * Cout * HW),
    )

    out3d = pl.pallas_call(
        _conv_mm_relu_kernel,
        out_shape=jax.ShapeDtypeStruct((N, Cout, HW), jnp.float32),
        grid_spec=pltpu.PrefetchScalarGridSpec(
            num_scalar_prefetch=0,
            grid=grid,
            in_specs=[
                pl.BlockSpec((None, TILE_K, TILE_HW), lambda n, m, k: (n, k, m)),
                pl.BlockSpec((Cout, TILE_K), lambda n, m, k: (0, k)),
                pl.BlockSpec((Cout, 1), lambda n, m, k: (0, 0)),
            ],
            out_specs=pl.BlockSpec((None, Cout, TILE_HW), lambda n, m, k: (n, 0, m)),
            scratch_shapes=[pltpu.VMEM((Cout, TILE_HW), jnp.float32)],
        ),
        compiler_params=pltpu.CompilerParams(
            dimension_semantics=("parallel", "parallel", "arbitrary"),
            allow_input_fusion=[True, False, False],
        ),
        cost_estimate=cost,
    )(patches, w2d, b2d)

    # (N, Cout, Ho*Wo) -> NCHW via a plain reshape (no transpose pass).
    return out3d.reshape(N, Cout, Ho, Wo)


# ----------------------------- parameter init ------------------------------ #
def init_cnn_layer_params(key, in_channels, out_channels):
    """Deterministic init mirroring nn.Conv2d default (uniform(+/-1/sqrt(fan_in)))."""
    fan_in = in_channels * KH * KW
    bound = 1.0 / jnp.sqrt(jnp.float32(fan_in))
    kw_, kb_ = jax.random.split(key)
    weight = jax.random.uniform(
        kw_, (out_channels, in_channels, KH, KW), jnp.float32, -bound, bound
    )
    bias = jax.random.uniform(kb_, (out_channels,), jnp.float32, -bound, bound)
    return weight, bias


# ----------------------------- reference (XLA) ----------------------------- #
def _reference_conv_relu(x_nchw, weight_oihw, bias):
    out = lax.conv_general_dilated(
        x_nchw, weight_oihw,
        window_strides=(STRIDE, STRIDE), padding="VALID",
        dimension_numbers=("NCHW", "OIHW", "NCHW"),
    )
    return jnp.maximum(out + bias[None, :, None, None], 0.0)


if __name__ == "__main__":
    key = jax.random.PRNGKey(0)
    k_x, k_p = jax.random.split(key)

    N, Cin, Cout, H, W = 2, 4, 8, 16, 16
    x = jax.random.normal(k_x, (N, Cin, H, W), jnp.float32)
    weight, bias = init_cnn_layer_params(k_p, Cin, Cout)

    out = jax.block_until_ready(cnn_layer_forward(x, weight, bias))

    ref = _reference_conv_relu(x, weight, bias)
    assert out.shape == ref.shape, (out.shape, ref.shape)
    assert jnp.allclose(out, ref, atol=1e-4, rtol=1e-4), "mismatch vs XLA reference"

    print("KERNEL_OK")
</pallas_src>

<mosaic_0001>
module attributes {stable_mosaic.version = 11 : i64} {
  func.func @_conv_mm_relu_kernel(%arg0: i32, %arg1: i32, %arg2: i32, %arg3: memref<1x64x49xf32, #tpu.memory_space<vmem>>, %arg4: memref<8x64xf32, #tpu.memory_space<vmem>>, %arg5: memref<8x1xf32, #tpu.memory_space<vmem>>, %arg6: memref<1x8x49xf32, #tpu.memory_space<vmem>>, %arg7: memref<8x49xf32, #tpu.memory_space<vmem>>) attributes {dimension_semantics = [#tpu.dimension_semantics<parallel>, #tpu.dimension_semantics<parallel>, #tpu.dimension_semantics<arbitrary>], iteration_bounds = array<i64: 2, 1, 1>, scalar_prefetch = 0 : i64, scratch_operands = 1 : i64, tpu.core_type = #tpu.core_type<tc>, window_params = [{transform_indices = @transform_0, window_bounds = array<i64: 1, 64, 49>}, {transform_indices = @transform_1, window_bounds = array<i64: 8, 64>}, {pipeline_mode = #tpu.pipeline_mode<synchronous>, transform_indices = @transform_2, window_bounds = array<i64: 8, 1>}, {transform_indices = @transform_3, window_bounds = array<i64: 1, 8, 49>}]} {
    %c0_i32 = arith.constant 0 : i32
    %0 = arith.cmpi eq, %arg2, %c0_i32 : i32
    %1 = arith.extui %0 : i1 to i32
    %c0_i32_0 = arith.constant 0 : i32
    %2 = arith.cmpi ne, %1, %c0_i32_0 : i32
    scf.if %2 {
      %c0_11 = arith.constant 0 : index
      %c0_12 = arith.constant 0 : index
      %13 = vector.load %arg5[%c0_11, %c0_12] : memref<8x1xf32, #tpu.memory_space<vmem>>, vector<8x1xf32>
      %14 = vector.shape_cast %13 : vector<8x1xf32> to vector<8x1xf32>
      %15 = vector.broadcast %14 : vector<8x1xf32> to vector<8x49xf32>
      %c0_13 = arith.constant 0 : index
      %c0_14 = arith.constant 0 : index
      %16 = vector.load %arg7[%c0_13, %c0_14] : memref<8x49xf32, #tpu.memory_space<vmem>>, vector<8x49xf32>
      tpu.vector_store %arg7[%c0_13, %c0_14], %15 {strides = array<i32>} : memref<8x49xf32, #tpu.memory_space<vmem>>, vector<8x49xf32>,
    } else {
    }
    %c0 = arith.constant 0 : index
    %c0_1 = arith.constant 0 : index
    %3 = vector.load %arg7[%c0, %c0_1] : memref<8x49xf32, #tpu.memory_space<vmem>>, vector<8x49xf32>
    %c0_2 = arith.constant 0 : index
    %c0_3 = arith.constant 0 : index
    %4 = vector.load %arg4[%c0_2, %c0_3] : memref<8x64xf32, #tpu.memory_space<vmem>>, vector<8x64xf32>
    %c0_4 = arith.constant 0 : index
    %c0_5 = arith.constant 0 : index
    %c0_6 = arith.constant 0 : index
    %5 = vector.load %arg3[%c0_4, %c0_5, %c0_6] : memref<1x64x49xf32, #tpu.memory_space<vmem>>, vector<1x64x49xf32>
    %6 = vector.shape_cast %5 : vector<1x64x49xf32> to vector<64x49xf32>
    %cst = arith.constant dense<0.000000e+00> : vector<8x49xf32>
    %7 = tpu.matmul %4, %6, %cst {dimension_numbers = #tpu.dot_dimension_numbers<[1], [0], [0], [1], [0, 0, 1, 1], [], []>} : vector<8x64xf32>, vector<64x49xf32>, vector<8x49xf32> -> vector<8x49xf32>
    %8 = arith.addf %3, %7 : vector<8x49xf32>
    %c0_7 = arith.constant 0 : index
    %c0_8 = arith.constant 0 : index
    %9 = vector.load %arg7[%c0_7, %c0_8] : memref<8x49xf32, #tpu.memory_space<vmem>>, vector<8x49xf32>
    tpu.vector_store %arg7[%c0_7, %c0_8], %8 {strides = array<i32>} : memref<8x49xf32, #tpu.memory_space<vmem>>, vector<8x49xf32>,
    %c0_i32_9 = arith.constant 0 : i32
    %10 = arith.cmpi eq, %arg2, %c0_i32_9 : i32
    %11 = arith.extui %10 : i1 to i32
    %c0_i32_10 = arith.constant 0 : i32
    %12 = arith.cmpi ne, %11, %c0_i32_10 : i32
    scf.if %12 {
      %c0_11 = arith.constant 0 : index
      %c0_12 = arith.constant 0 : index
      %13 = vector.load %arg7[%c0_11, %c0_12] : memref<8x49xf32, #tpu.memory_space<vmem>>, vector<8x49xf32>
      %cst_13 = arith.constant 0.000000e+00 : f32
      %14 = vector.broadcast %cst_13 : f32 to vector<8x49xf32>
      %15 = arith.maximumf %13, %14 : vector<8x49xf32>
      %c0_14 = arith.constant 0 : index
      %c0_15 = arith.constant 0 : index
      %c0_16 = arith.constant 0 : index
      %16 = vector.load %arg6[%c0_14, %c0_15, %c0_16] : memref<1x8x49xf32, #tpu.memory_space<vmem>>, vector<1x8x49xf32>
      %17 = vector.shape_cast %16 : vector<1x8x49xf32> to vector<8x49xf32>
      %18 = vector.shape_cast %15 : vector<8x49xf32> to vector<1x8x49xf32>
      tpu.vector_store %arg6[%c0_14, %c0_15, %c0_16], %18 {strides = array<i32>} : memref<1x8x49xf32, #tpu.memory_space<vmem>>, vector<1x8x49xf32>,
    } else {
    }
    return
  }
  func.func @transform_0(%arg0: i32, %arg1: i32, %arg2: i32) -> (i32, i32, i32) {
    %c0_i32 = arith.constant 0 : i32
    return %arg0, %arg2, %arg1 : i32, i32, i32
  }
  func.func @transform_1(%arg0: i32, %arg1: i32, %arg2: i32) -> (i32, i32) {
    %c0_i32 = arith.constant 0 : i32
    %c0_i32_0 = arith.constant 0 : i32
    return %c0_i32, %arg2 : i32, i32
  }
  func.func @transform_2(%arg0: i32, %arg1: i32, %arg2: i32) -> (i32, i32) {
    %c0_i32 = arith.constant 0 : i32
    %c0_i32_0 = arith.constant 0 : i32
    %c0_i32_1 = arith.constant 0 : i32
    return %c0_i32, %c0_i32_0 : i32, i32
  }
  func.func @transform_3(%arg0: i32, %arg1: i32, %arg2: i32) -> (i32, i32, i32) {
    %c0_i32 = arith.constant 0 : i32
    %c0_i32_0 = arith.constant 0 : i32
    return %arg0, %c0_i32, %arg1 : i32, i32, i32
  }
}

</mosaic_0001>

<bundles_post_ra>
// kernel: cnn_layer_forward.1
= control target key start
LH: loop header
LB: loop body
LE: loop exit
PB: predicated region body
PF: predicated region fallthrough
CT: control target
= control target key end

     0   :  { %s574_s12 = smov 0   ;;  %s576_s13 = smov 0   ;;  %s617_s0 = inlined_call_operand.vmem [shape: f32[2,64,49], index: 0, kind: input, shape index: {}]   ;;  %s618_s1 = inlined_call_operand.vmem [shape: f32[8,64], index: 1, kind: input, shape index: {}]   ;;  %s619_s2 = inlined_call_operand.vmem [shape: f32[8,1], index: 2, kind: input, shape index: {}]   ;;  %s620_s3 = inlined_call_operand.vmem [shape: f32[2,8,49], index: 3, kind: output, shape index: {}]  }
   0x1   :  { %s578_s14 = smov 0  }
   0x2 LB: > { %s32_s15 = sadd.s32 1, %s544_s13  ;;  %p449_p0 = scmp.ge.s32.totalorder %s548_s14, 1  ;;  %s548_s14 = sphi %s578_s14, %s13_s14   ;;  %s544_s13 = sphi %s576_s13, %s622_s13   ;;  %s540_s12 = sphi %s574_s12, %s621_s12  }
   0x3   : > { %p34_p1 = scmp.ge.s32.totalorder %s32_s15, 2  ;;  %p179_p2 = scmp.lt.s32.totalorder %s548_s14, 3 }
   0x5   : > { %s624_s15 = smov (%p34_p1, %s32_s15), 0  ;;  %p180_p3 = pnand %p449_p0, %p179_p2 }
   0x6   : > { %p217_p4 = scmp.lt.s32.totalorder (!%p180_p3), %s540_s12, 1  ;;  %v550_v0 = vmov (!%p180_p3), 0.0|0.0   ;;  %vm551_vm0 = vmmov (!%p180_p3), 0   ;;  %v552_v1 = vmov (!%p180_p3), 0.0   ;;  %v244_v2 = vld [vmem:[%s619_s2] sm:$0xff] (!%p180_p3)  ;;  %v553_v3 = vmov (!%p180_p3), 0  }
   0x7   : > { %183 = sbr.rel (%p180_p3) target bundleno = 260 (0x104), region = 32  ;;  %485 = vmatprep.subr.bf16.mxu0 (!%p180_p3), %v550_v0  ;;  %482 = vmatprep.mubr.msk.f32.mxu0 (!%p180_p3), %vm551_vm0, %v552_v1  ;;  %v253_v16 = vld [vmem:[%s618_s1] sm:$0xff] (!%p180_p3)  ;;  %vm262_vm1 = vcmask (!%p180_p3), 523264   ;;  %vm250_vm2 = vcmask (!%p180_p3), 400384  }
   0x8   : > { %525 = vset.pattern.permute.xlu0 (!%p180_p3), %v553_v3 }
   0x9   : > { %247 = vperm.xlu0 (!%p180_p3), %525, %v244_v2  }
   0xe   : > { %s626_s12 = smov (!%p217_p4, %s540_s12), 1 }
   0xf   : > { %s456_s18 = sshll.u32 %s626_s12, 6  ;;  %s452_s24 = sshll.u32 %s626_s12, 3 }
  0x10   : > { %s227_s21 = scalar_lea.vmem %s617_s0, %s456_s18  ;;  %s239_s27 = scalar_lea.vmem %s620_s3, %s452_s24 }
  0x11   : > { %v254_v4 = vld [vmem:[%s227_s21] sm:$0xff]  ;;  %v255_v5 = vld [vmem:[%s227_s21 + $0x8] sm:$0xff]  ;;  %v256_v6 = vld [vmem:[%s227_s21 + $0x10] sm:$0xff] }
  0x12   : > { %v486_v7 = vpack.c.bf16 %v255_v5, %v254_v4  ;;  %v257_v8 = vld [vmem:[%s227_s21 + $0x18] sm:$0xff]  ;;  %v258_v10 = vld [vmem:[%s227_s21 + $0x20] sm:$0xff]  ;;  %v259_v11 = vld [vmem:[%s227_s21 + $0x28] sm:$0xff] }
  0x13   : > { %v489_v9 = vpack.c.bf16 %v257_v8, %v256_v6  ;;  %v492_v12 = vpack.c.bf16 %v259_v11, %v258_v10  ;;  %v260_v13 = vld [vmem:[%s227_s21 + $0x30] sm:$0xff]  ;;  %v261_v14 = vld [vmem:[%s227_s21 + $0x38] sm:$0xff] }
  0x14   : > { %487 = vmatpush3.bf16.msra.mxu0 %v486_v7  ;;  %v495_v15 = vpack.c.bf16 %v261_v14, %v260_v13 }
  0x15   : > { %488 = vmatprep.subr.bf16.mxu0 %v550_v0 }
  0x18   : > { %490 = vmatpush3.bf16.msra.mxu0 %v489_v9 }
  0x19   : > { %491 = vmatprep.subr.bf16.mxu0 %v550_v0 }
  0x1c   : > { %493 = vmatpush3.bf16.msra.mxu0 %v492_v12 }
  0x1d   : > { %494 = vmatprep.subr.bf16.mxu0 %v550_v0 }
  0x20   : > { %496 = vmatpush3.bf16.msra.mxu0 %v495_v15 }
  0x23   : > { %483 = vmatmul.mubr.msk.f32.vlgmr.msra.gmra.mrb[0].mxu0 %vm262_vm1, %v253_v16 }
  0x88   : > { %v248_v17 = vpop.permute.xlu0 %247 }
  0x89   : > { %251 = vst.msk [vmem:[#allocation2] sm:$0xff] %vm250_vm2, %v248_v17 }
  0x90   : > { %v252_v18 = vld [vmem:[#allocation2] sm:$0xff] }
  0xf6   : > { %v332_v19 = vpop.f32.mrb[0].mxu0 }
  0xf7   : > { %v336_v20 = vadd.f32 %v332_v19, %v252_v18  ;;  %v484_v21 = vpop.f32.mrb[1].mxu0 }
  0xf9   : > { %338 = vst.msk [vmem:[#allocation2] sm:$0xff] %vm250_vm2, %v336_v20 }
 0x100   : > { %v342_v22 = vld [vmem:[#allocation2] sm:$0xff] }
 0x101   : > { %v343_v23 = vmax.f32 %v342_v22, 0.0 }
 0x103   : > { %344 = vst.msk [vmem:[%s239_s27] sm:$0xff] %vm250_vm2, %v343_v23 }
 0x104 PF: > { %s13_s14 = sadd.s32 1, %s548_s14   ;;  %s621_s12 = smov %s544_s13 }
 0x105   : > { %p10_p5 = scmp.ge.s32.totalorder %s13_s14, 4   ;;  %s622_s13 = smov %s624_s15 }
 0x107   :  { %12 = sbr.rel (!%p10_p5) target bundleno = 2 (0x2), region = 73 }

</bundles_post_ra>
